<compile_context>
chip_gen: v7x
topology: tpu7x:2x2x1
jax: 0.10.0
libtpu: 0.0.40
codegen_flags: <defaults>
</compile_context>

<pallas_src>
import jax
import jax.numpy as jnp
from jax.experimental import pallas as pl
from jax.experimental.pallas import tpu as pltpu


def _pad_axis(a, mult, axis):
    pad = (-a.shape[axis]) % mult
    if pad == 0:
        return a
    widths = [(0, 0)] * a.ndim
    widths[axis] = (0, pad)
    return jnp.pad(a, widths)


# ----------------------------------------------------------------------------
# Kernel 1: lane-dense conv-as-matmul    o = relu(w @ patches + b)
#   w_ref: (Cout, K) bf16   x_ref: (K, Mt) bf16   b_ref: (Cout, 1) f32
#   o_ref: (Cout, Mt) f32
# K fits in one block -> no reduction grid, no scratch accumulator.
# ----------------------------------------------------------------------------
def _conv_matmul_kernel(w_ref, x_ref, b_ref, o_ref):
    acc = jnp.dot(w_ref[...], x_ref[...], preferred_element_type=jnp.float32)
    o_ref[...] = jnp.maximum(acc + b_ref[...], 0.0).astype(o_ref.dtype)


def conv3x3_relu(x, w, b, mt=256):
    """Conv2d(stride=1, pad=1) + ReLU.  x:(B,Cin,H,W)  w:(Cout,Cin,3,3).

    Returns the activation in (Cout, B, H, W) layout (lane-dense kernel output).
    """
    B, Cin, H, W = x.shape
    Cout = w.shape[0]
    M = B * H * W
    K = Cin * 9

    # im2col with K on sublanes and B*H*W on lanes; built with slices+stack so
    # there is no large NCHW<->NHWC shuffle of the 9x-expanded tensor.
    xp = jnp.pad(x, ((0, 0), (0, 0), (1, 1), (1, 1)))
    cols = [xp[:, c, di:di + H, dj:dj + W]          # each (B, H, W)
            for c in range(Cin) for di in range(3) for dj in range(3)]
    patches = jnp.stack(cols, axis=0).reshape(K, M)  # (Cin*9, B*H*W), c-major
    w2 = w.reshape(Cout, K)                          # same (c, ki, kj) K order

    # Pad: K only to a multiple of 8 (full-array block, 128 rule exempt),
    # Cout to a multiple of 8 (sublanes), M to the lane-tile multiple.
    patches = _pad_axis(_pad_axis(patches, 8, 0), mt, 1).astype(jnp.bfloat16)
    w2 = _pad_axis(_pad_axis(w2, 8, 0), 8, 1).astype(jnp.bfloat16)
    bp = _pad_axis(b[:, None].astype(jnp.float32), 8, 0)
    Cp, Kp = w2.shape
    Mp = patches.shape[1]

    cost = pl.CostEstimate(
        flops=2 * Cp * Kp * Mp,
        transcendentals=0,
        bytes_accessed=w2.size * 2 + patches.size * 2 + bp.size * 4 + Cp * Mp * 4,
    )
    out = pl.pallas_call(
        _conv_matmul_kernel,
        out_shape=jax.ShapeDtypeStruct((Cp, Mp), jnp.float32),
        grid=(Mp // mt,),
        in_specs=[
            pl.BlockSpec((Cp, Kp), lambda j: (0, 0)),   # weights: VMEM resident
            pl.BlockSpec((Kp, mt), lambda j: (0, j)),   # patches: M-tiled
            pl.BlockSpec((Cp, 1), lambda j: (0, 0)),    # bias
        ],
        out_specs=pl.BlockSpec((Cp, mt), lambda j: (0, j)),
        compiler_params=pltpu.CompilerParams(
            dimension_semantics=("parallel",)),
        cost_estimate=cost,
    )(w2, patches, bp)

    return out[:Cout, :M].reshape(Cout, B, H, W)


def maxpool2x2_cbhw(x):
    C, B, H, W = x.shape
    return x.reshape(C, B, H // 2, 2, W // 2, 2).max(axis=(3, 5))


# ----------------------------------------------------------------------------
# Kernel 2: fused classifier + top_layer
#   fc1 -> ReLU -> Dropout(eval) -> fc2 -> ReLU -> top, all in one pallas_call.
# ----------------------------------------------------------------------------
def _classifier_kernel(x_ref, w1_ref, b1_ref, w2_ref, b2_ref, w3_ref, b3_ref,
                       o_ref):
    h = jnp.dot(x_ref[...], w1_ref[...], preferred_element_type=jnp.float32)
    h = jnp.maximum(h + b1_ref[...], 0.0)
    # TODO(synk): Dropout(0.5) applied as eval-mode identity (no RNG mask).
    h = jnp.dot(h.astype(w2_ref.dtype), w2_ref[...],
                preferred_element_type=jnp.float32)
    h = jnp.maximum(h + b2_ref[...], 0.0)
    y = jnp.dot(h.astype(w3_ref.dtype), w3_ref[...],
                preferred_element_type=jnp.float32)
    o_ref[...] = (y + b3_ref[...]).astype(o_ref.dtype)


def fused_classifier(x, params, nclass):
    """x:(B, F) f32 -> logits (B, nclass)."""
    B, F = x.shape
    xp = _pad_axis(x, 8, 0).astype(jnp.bfloat16)
    Bp = xp.shape[0]

    w1 = params["fc1_w"].astype(jnp.bfloat16)
    b1 = params["fc1_b"][None, :].astype(jnp.float32)
    w2 = params["fc2_w"].astype(jnp.bfloat16)
    b2 = params["fc2_b"][None, :].astype(jnp.float32)
    # Pad the 2-wide top layer to one full 128-lane tile (cheap, unmasked store).
    w3 = _pad_axis(params["top_w"], 128, 1).astype(jnp.bfloat16)
    b3 = _pad_axis(params["top_b"][None, :], 128, 1).astype(jnp.float32)
    H1, H2, Np = w1.shape[1], w2.shape[1], w3.shape[1]

    cost = pl.CostEstimate(
        flops=2 * Bp * (F * H1 + H1 * H2 + H2 * Np),
        transcendentals=0,
        bytes_accessed=(xp.size + w1.size + w2.size + w3.size) * 2
                       + (b1.size + b2.size + b3.size) * 4 + Bp * Np * 4,
    )
    vmem = pl.BlockSpec(memory_space=pltpu.MemorySpace.VMEM)
    out = pl.pallas_call(
        _classifier_kernel,
        out_shape=jax.ShapeDtypeStruct((Bp, Np), jnp.float32),
        in_specs=[vmem] * 7,
        out_specs=vmem,
        cost_estimate=cost,
    )(xp, w1, b1, w2, b2, w3, b3)
    return out[:B, :nclass]


# ----------------------------------------------------------------------------
# Parameter init (deterministic, PyTorch-style uniform(-1/sqrt(fan_in), ...))
# ----------------------------------------------------------------------------
def init_params(key, cin=3, cfeat=16, h1=64, h2=32, nclass=2):
    ks = jax.random.split(key, 8)

    def u(k, shape, fan_in):
        bound = 1.0 / float(fan_in) ** 0.5
        return jax.random.uniform(k, shape, jnp.float32, -bound, bound)

    fin = cfeat * 9 * 9
    return {
        "conv_w": u(ks[0], (cfeat, cin, 3, 3), cin * 9),
        "conv_b": u(ks[1], (cfeat,), cin * 9),
        "fc1_w": u(ks[2], (fin, h1), fin),
        "fc1_b": u(ks[3], (h1,), fin),
        "fc2_w": u(ks[4], (h1, h2), h1),
        "fc2_b": u(ks[5], (h2,), h1),
        "top_w": u(ks[6], (h2, nclass), h2),
        "top_b": u(ks[7], (nclass,), h2),
    }


# ----------------------------------------------------------------------------
# Forward pass (mirrors new_vgg.forward)
# ----------------------------------------------------------------------------
def new_vgg_forward(params, x, nclass=2):
    # self.features(x)
    f = conv3x3_relu(x, params["conv_w"], params["conv_b"])   # (Cout, B, H, W)
    f = maxpool2x2_cbhw(f)                                    # (Cout, B, 9, 9)
    # x.view(x.size(0), -1)  — PyTorch NCHW (C-major) flatten order; the
    # transpose here acts on the tiny pooled tensor only.
    B = x.shape[0]
    flat = f.transpose(1, 0, 2, 3).reshape(B, -1)             # (B, Cout*9*9)
    # classifier (Linear->ReLU->Dropout->Linear->ReLU) + top_layer, fused.
    return fused_classifier(flat, params, nclass)


if __name__ == "__main__":
    key = jax.random.PRNGKey(0)
    k_param, k_x = jax.random.split(key)
    params = init_params(k_param)
    # batch=2, 3 channels, 18x18 spatial -> pooled to 9x9 (matches the
    # "* 9 * 9" flatten structure of the original classifier).
    x = jax.random.normal(k_x, (2, 3, 18, 18), dtype=jnp.float32)

    out = new_vgg_forward(params, x)
    out = jax.block_until_ready(out)
    assert out.shape == (2, 2), out.shape
    print("KERNEL_OK")
</pallas_src>

<mosaic_0001>
module attributes {stable_mosaic.version = 11 : i64} {
  func.func @_conv_matmul_kernel(%arg0: i32, %arg1: memref<16x32xbf16, #tpu.memory_space<vmem>>, %arg2: memref<32x256xbf16, #tpu.memory_space<vmem>>, %arg3: memref<16x1xf32, #tpu.memory_space<vmem>>, %arg4: memref<16x256xf32, #tpu.memory_space<vmem>>) attributes {dimension_semantics = [#tpu.dimension_semantics<parallel>], iteration_bounds = array<i64: 3>, scalar_prefetch = 0 : i64, scratch_operands = 0 : i64, tpu.core_type = #tpu.core_type<tc>, window_params = [{pipeline_mode = #tpu.pipeline_mode<synchronous>, transform_indices = @transform_0, window_bounds = array<i64: 16, 32>}, {transform_indices = @transform_1, window_bounds = array<i64: 32, 256>}, {pipeline_mode = #tpu.pipeline_mode<synchronous>, transform_indices = @transform_2, window_bounds = array<i64: 16, 1>}, {transform_indices = @transform_3, window_bounds = array<i64: 16, 256>}]} {
    %c0 = arith.constant 0 : index
    %c0_0 = arith.constant 0 : index
    %0 = vector.load %arg1[%c0, %c0_0] : memref<16x32xbf16, #tpu.memory_space<vmem>>, vector<16x32xbf16>
    %c0_1 = arith.constant 0 : index
    %c0_2 = arith.constant 0 : index
    %1 = vector.load %arg2[%c0_1, %c0_2] : memref<32x256xbf16, #tpu.memory_space<vmem>>, vector<32x256xbf16>
    %cst = arith.constant dense<0.000000e+00> : vector<16x256xf32>
    %2 = tpu.matmul %0, %1, %cst {dimension_numbers = #tpu.dot_dimension_numbers<[1], [0], [0], [1], [0, 0, 1, 1], [], []>} : vector<16x32xbf16>, vector<32x256xbf16>, vector<16x256xf32> -> vector<16x256xf32>
    %c0_3 = arith.constant 0 : index
    %c0_4 = arith.constant 0 : index
    %3 = vector.load %arg3[%c0_3, %c0_4] : memref<16x1xf32, #tpu.memory_space<vmem>>, vector<16x1xf32>
    %4 = vector.broadcast %3 : vector<16x1xf32> to vector<16x256xf32>
    %5 = arith.addf %2, %4 : vector<16x256xf32>
    %cst_5 = arith.constant 0.000000e+00 : f32
    %6 = vector.broadcast %cst_5 : f32 to vector<16x256xf32>
    %7 = arith.maximumf %5, %6 : vector<16x256xf32>
    %c0_6 = arith.constant 0 : index
    %c0_7 = arith.constant 0 : index
    %8 = vector.load %arg4[%c0_6, %c0_7] : memref<16x256xf32, #tpu.memory_space<vmem>>, vector<16x256xf32>
    tpu.vector_store %arg4[%c0_6, %c0_7], %7 {strides = array<i32>} : memref<16x256xf32, #tpu.memory_space<vmem>>, vector<16x256xf32>,
    return
  }
  func.func @transform_0(%arg0: i32) -> (i32, i32) {
    %c0_i32 = arith.constant 0 : i32
    %c0_i32_0 = arith.constant 0 : i32
    %c0_i32_1 = arith.constant 0 : i32
    return %c0_i32, %c0_i32_0 : i32, i32
  }
  func.func @transform_1(%arg0: i32) -> (i32, i32) {
    %c0_i32 = arith.constant 0 : i32
    %c0_i32_0 = arith.constant 0 : i32
    return %c0_i32, %arg0 : i32, i32
  }
  func.func @transform_2(%arg0: i32) -> (i32, i32) {
    %c0_i32 = arith.constant 0 : i32
    %c0_i32_0 = arith.constant 0 : i32
    %c0_i32_1 = arith.constant 0 : i32
    return %c0_i32, %c0_i32_0 : i32, i32
  }
  func.func @transform_3(%arg0: i32) -> (i32, i32) {
    %c0_i32 = arith.constant 0 : i32
    %c0_i32_0 = arith.constant 0 : i32
    return %c0_i32, %arg0 : i32, i32
  }
}

</mosaic_0001>

<bundles_post_ra>
// kernel: tpu_custom_call.1
= control target key start
LH: loop header
LB: loop body
LE: loop exit
PB: predicated region body
PF: predicated region fallthrough
CT: control target
= control target key end

     0   :  { %8 = vsyncpa [#allocation3], 0  ;;  %s758_s0 = inlined_call_operand.vmem [shape: bf16[16,32], index: 0, kind: input, shape index: {}]   ;;  %s759_s1 = inlined_call_operand.hbm [shape: bf16[32,768], index: 1, kind: input, shape index: {}]   ;;  %s760_s2 = inlined_call_operand.vmem [shape: f32[16,1], index: 2, kind: input, shape index: {}]   ;;  %s761_s3 = inlined_call_operand.hbm [shape: f32[16,768], index: 3, kind: output, shape index: {}]  }
   0x1   :  { %10 = vsyncpa [#allocation3 + $0x1], 0 }
   0x2   :  { %11 = vsyncpa [#allocation4], 0 }
   0x3   :  { %13 = vsyncpa [#allocation4 + $0x1], 0  ;;  %s587_s12 = smov 0   ;;  %s589_s13 = smov 0  }
   0x4   :  { %s591_s14 = smov 0   ;;  %s593_s15 = smov 0  }
   0x5 LB: > { %s608_s16 = sadd.s32 4294967295, %s556_s15   ;;  %s377_s17 = sadd.s32 4294967294, %s556_s15   ;;  %s556_s15 = sphi %s593_s15, %s774_s15   ;;  %s552_s14 = sphi %s591_s14, %s773_s14   ;;  %s548_s13 = sphi %s589_s13, %s772_s13   ;;  %s544_s12 = sphi %s587_s12, %s771_s12  }
   0x6   : > { %s612_s18 = sadd.s32 1, %s556_s15   ;;  %s47_s19 = sadd.s32 1, %s552_s14 }
   0x7   : > { %s44_s20 = ssub.s32 %s556_s15, %s612_s18  ;;  %p54_p0 = scmp.ne.s32.totalorder %s552_s14, %s548_s13 }
   0x8   : > { %p45_p1 = scmp.eq.s32.totalorder %s44_s20, 0  ;;  %p55_p2 = scmp.eq.s32.totalorder %s556_s15, 0 }
   0x9   : > { %p60_p3 = scmp.ne.s32.totalorder %s548_s13, %s544_s12  ;;  %p61_p4 = scmp.eq.s32.totalorder %s608_s16, 0 }
   0xa   : > { %s624_s21 = scalar_select %p45_p1, %s552_s14, %s47_s19  }
   0xb   : > { %p626_p5 = por %p55_p2, %p54_p0  ;;  %p630_p6 = por %p61_p4, %p60_p3 }
   0xc   : > { %p105_p7 = scmp.eq.s32.totalorder %s608_s16, 2  ;;  %p111_p8 = scmp.eq.s32.totalorder %s377_s17, 2 }
   0xd   : > { %p411_p9 = scmp.lt.s32.totalorder %s556_s15, 3  ;;  %s137_s26 = sand.u32 1, %s552_s14  }
   0xe   : > { %p636_p10 = por %p105_p7, %p54_p0  ;;  %p640_p11 = por %p111_p8, %p60_p3 }
   0xf   : > { %s397_s27 = sshll.u32 %s556_s15, 7  ;;  %s380_s28 = sshll.u32 %s137_s26, 5 }
  0x10   : > { %s765_s24 = scalar_select %p636_p10, 1, 0 }
  0x11   : > { %s766_s25 = scalar_select %p640_p11, 1, 0 }
  0x12   : > { %s649_s4 = scalar_lea.hbm %s759_s1, %s397_s27  ;;  %s141_s5 = scalar_lea.vmem [#allocation2], %s380_s28 }
  0x13   : > { %s148_s6 = sshll.u32 %s141_s5, 4  ;;  %p653_p12 = pnand %p411_p9, %p626_p5  ;;  %s657_s6 = int_to_ptr.vmem [resolvable:$true] %s148_s6 }
  0x14   : > { %s660_s8 = scalar_lea.sflag [#allocation3], %s137_s26  ;;  %s460_s9 = scalar_lea.hbm %s649_s4, 512 }
  0x15   : > { %p461_p0 = scmp.ne.s32.totalorder %s649_s4, %s460_s9  ;;  %p462_p1 = pneg %p653_p12 }
  0x16   : > { %s465_s17 = scalar_lea.hbm %s759_s1, 1536  ;;  %p466_p4 = scmp.lt.u32.totalorder %s649_s4, %s759_s1 }
  0x17   : > { %p463_p2 = pnand %p462_p1, %p461_p0  ;;  %p467_p5 = scmp.lt.u32.totalorder %s465_s17, %s460_s9 }
  0x18   : > { %p469_p8 = scmp.lt.u32.totalorder %s460_s9, %s649_s4 }
  0x19   : > { %p464_p3 = pneg %p463_p2  ;;  %p468_p7 = por %p467_p5, %p466_p4 }
  0x1b   : > { %p470_p9 = por %p469_p8, %p468_p7 }
  0x1d   : > { %p471_p13 = pnand %p470_p9, %p464_p3 }
  0x1f   : > { %474 = shalt.err (!%p471_p13)
}
  0x20   : > { %s475_s22 = scalar_lea.vmem %s657_s6, 512  ;;  %s558_s26 = smov [#allocation2]  }
  0x21   : > { %p476_p0 = scmp.ne.s32.totalorder %s657_s6, %s475_s22  ;;  %s480_s27 = sshll.u32 %s558_s26, 4  ;;  %s481_s27 = int_to_ptr.vmem [resolvable:$false] %s480_s27 }
  0x22   : > { %s482_s28 = scalar_lea.vmem %s481_s27, 1024  ;;  %p483_p10 = scmp.lt.s32.totalorder %s657_s6, %s481_s27 }
  0x23   : > { %p478_p2 = pnand %p476_p0, %p462_p1  ;;  %p484_p4 = scmp.lt.s32.totalorder %s482_s28, %s475_s22 }
  0x25   : > { %p479_p11 = pneg %p478_p2  ;;  %p485_p5 = por %p484_p4, %p483_p10 }
  0x27   : > { %p486_p7 = pnand %p485_p5, %p479_p11 }
  0x29   : > { %489 = shalt.err (!%p486_p7)
}
  0x2a   : > { %s559_s29 = smov 384   ;;  %s560_s30 = smov 128  }
  0x2b   : > { %s561_s5 = smov 8   ;;  %p156_p13 = scmp.lt.s32.totalorder %s556_s15, 4 }
  0x2c   : > { %406 = dma.hbm_to_vmem [thread:$0]  (!%p653_p12), %s649_s4, 512, %s657_s6, %s660_s8, %s559_s29, %s560_s30, %s561_s5  }
  0x2d   : > { %p768_p1 = scmp.ge.s32.totalorder %s556_s15, 1 }
  0x2f   : > { %p157_p3 = pnand %p768_p1, %p156_p13 }
  0x30   : > { %s692_s9 = sand.u32 (!%p157_p3), 1, %s548_s13  }
  0x31   : > { %160 = sbr.rel (%p157_p3) target bundleno = 302 (0x12e), region = 32  ;;  %s384_s10 = sshll.u32 (!%p157_p3), %s692_s9, 5 }
  0x32   : > { %s163_s11 = scalar_lea.sflag (!%p157_p3), [#allocation3], %s692_s9  ;;  %s166_s17 = scalar_lea.vmem (!%p157_p3), [#allocation2], %s384_s10 }
  0x38   : > { %535 = dma.done.wait (%p630_p6), %s163_s11, 512  }
  0x39   : > { %537 = vsyncadd (%p630_p6), %s163_s11, 4294966784  ;;  %v562_v0 = vmov 0   ;;  %v453_v1 = vld [vmem:[%s166_s17 + $0x4] ss:$8 sps:$4 sm:$0xff]   ;;  %v455_v2 = vld [vmem:[%s166_s17] ss:$8 sps:$4 sm:$0xff]  }
  0x3a   : > { %271 = vmatprep.mubr.bf16.mxu0 %v562_v0  ;;  %452 = vset.pattern.permute.xlu0 %v562_v0  ;;  %v456_v3 = vld [vmem:[%s166_s17 + $0x14] ss:$8 sps:$4 sm:$0xff]   ;;  %v458_v4 = vld [vmem:[%s166_s17 + $0x10] ss:$8 sps:$4 sm:$0xff]   ;;  %v198_v5 = vld [vmem:[%s760_s2] sm:$0xff]  ;;  %vm235_vm0 = vcmask 261120  }
  0x3b   : > { %239 = vmatprep.subr.bf16.mxu0 %v453_v1  ;;  %202 = vperm.xlu0 %452, %v198_v5   ;;  %v199_v6 = vld [vmem:[%s760_s2 + $0x8] sm:$0xff]  ;;  %v459_v7 = vld [vmem:[%s758_s0] sm:$0xff]   ;;  %s188_s20 = scalar_lea.vmem [#allocation5], %s384_s10  ;;  %s398_s26 = sshll.u32 %s608_s16, 8 }
  0x3c   : > { %240 = vmatpush1.bf16.msra.mxu0 %v455_v2  ;;  %s304_s22 = sshll.u32 %s188_s20, 4  ;;  %s715_s29 = scalar_lea.hbm %s761_s3, %s398_s26  ;;  %s710_s22 = int_to_ptr.vmem [resolvable:$true] %s304_s22 }
  0x3d   : > { %241 = vmatprep.subr.bf16.mxu0 %v456_v3  ;;  %s291_s16 = scalar_lea.sflag [#allocation4], %s692_s9  ;;  %s490_s30 = scalar_lea.vmem %s710_s22, 512 }
  0x3e   : > { %p491_p6 = scmp.ne.s32.totalorder %s710_s22, %s490_s30  ;;  %p769_p10 = scmp.ne.s32.totalorder %s765_s24, 0 }
  0x3f   : > { %207 = vperm.xlu0 %452, %v199_v6   ;;  %s563_s5 = smov [#allocation5]  }
  0x40   : > { %242 = vmatpush1.bf16.msra.mxu0 %v458_v4  ;;  %p492_p11 = pnand %p491_p6, %p769_p10  ;;  %s494_s10 = sshll.u32 %s563_s5, 4  ;;  %s495_s10 = int_to_ptr.vmem [resolvable:$false] %s494_s10 }
  0x41   : > { %s496_s11 = scalar_lea.vmem %s495_s10, 1024  ;;  %p497_p8 = scmp.lt.s32.totalorder %s710_s22, %s495_s10 }
  0x42   : > { %p493_p12 = pneg %p492_p11  ;;  %p498_p9 = scmp.lt.s32.totalorder %s496_s11, %s490_s30 }
  0x43   : > { %391 = vmatmul.mubr.msk.bf16.vlgmr.msra.gmra.mrb[0].mxu0 %vm235_vm0, %v459_v7 }
  0x44   : > { %p499_p0 = por %p498_p9, %p497_p8 }
  0x46   : > { %p500_p2 = pnand %p499_p0, %p493_p12 }
  0xba   : > { %v203_v8 = vpop.permute.xlu0 %202 }
  0xbe   : > { %v208_v12 = vpop.permute.xlu0 %207 }
 0x116   : > { %v273_v9 = vpop.f32.mrb[0].mxu0 }
 0x117   : > { %v274_v10 = vadd.f32 %v273_v9, %v203_v8  ;;  %v275_v11 = vpop.f32.mrb[1].mxu0 }
 0x118   : > { %v276_v13 = vadd.f32 %v275_v11, %v203_v8  ;;  %v277_v14 = vpop.f32.mrb[2].mxu0 }
 0x119   : > { %v282_v15 = vmax.f32 %v274_v10, 0.0  ;;  %v278_v16 = vadd.f32 %v277_v14, %v208_v12  ;;  %v279_v17 = vpop.f32.mrb[3].mxu0 }
 0x11a   : > { %v283_v18 = vmax.f32 %v276_v13, 0.0  ;;  %v280_v19 = vadd.f32 %v279_v17, %v208_v12 }
 0x11b   : > { %286 = vst [vmem:[%s188_s20] sm:$0xff] %v282_v15  ;;  %v284_v20 = vmax.f32 %v278_v16, 0.0 }
 0x11c   : > { %287 = vst [vmem:[%s188_s20 + $0x8] sm:$0xff] %v283_v18  ;;  %v285_v21 = vmax.f32 %v280_v19, 0.0 }
 0x11d   : > { %288 = vst [vmem:[%s188_s20 + $0x10] sm:$0xff] %v284_v20 }
 0x11e   : > { %289 = vst [vmem:[%s188_s20 + $0x18] sm:$0xff] %v285_v21 }
 0x11f   : > { %503 = shalt.err (!%p500_p2)
}
 0x120   : > { %s504_s17 = scalar_lea.hbm %s715_s29, 512  ;;  %s508_s7 = scalar_lea.hbm %s761_s3, 1536 }
 0x121   : > { %p505_p4 = scmp.ne.s32.totalorder %s715_s29, %s504_s17  ;;  %p509_p13 = scmp.lt.u32.totalorder %s715_s29, %s761_s3 }
 0x122   : > { %p510_p1 = scmp.lt.u32.totalorder %s508_s7, %s504_s17  ;;  %p512_p6 = scmp.lt.u32.totalorder %s504_s17, %s715_s29 }
 0x123   : > { %p506_p5 = pnand %p505_p4, %p769_p10 }
 0x124   : > { %p511_p3 = por %p510_p1, %p509_p13 }
 0x125   : > { %p507_p7 = pneg %p506_p5 }
 0x126   : > { %p513_p11 = por %p512_p6, %p511_p3 }
 0x128   : > { %p514_p12 = pnand %p513_p11, %p507_p7 }
 0x12a   : > { %517 = shalt.err (!%p514_p12)
}
 0x12b   : > { %s564_s19 = smov 256   ;;  %s565_s20 = smov 768  }
 0x12c   : > { %s566_s26 = smov 16  }
 0x12d   : > { %401 = dma.vmem_to_hbm [thread:$0]  (%p769_p10), %s710_s22, 512, %s715_s29, %s291_s16, %s564_s19, %s565_s20, %s566_s26  }
 0x12e PF: > { %p412_p8 = scmp.ge.s32.totalorder %s556_s15, 2  ;;  %s319_s27 = sand.u32 1, %s544_s12  }
 0x12f   : > { %p770_p9 = scmp.ne.s32.totalorder %s766_s25, 0  ;;  %s320_s28 = scalar_lea.sflag [#allocation4], %s319_s27 }
 0x131   : > { %p408_p0 = pnand %p412_p8, %p770_p9 }
 0x133   : > { %539 = dma.done.wait (!%p408_p0), %s320_s28, 512  }
 0x134   : > { %541 = vsyncadd (!%p408_p0), %s320_s28, 4294966784  ;;  %p16_p2 = scmp.ge.s32.totalorder %s612_s18, 5   ;;  %s771_s12 = smov %s548_s13 }
 0x135   : > { %s772_s13 = smov %s552_s14  ;;  %s773_s14 = smov %s624_s21 }
 0x136   : > { %s774_s15 = smov %s612_s18  ;;  %18 = sbr.rel (!%p16_p2) target bundleno = 5 (0x5), region = 77 }
 0x13d   :  { %325 = vsyncpa [#allocation3], 1 }
 0x13e   :  { %327 = vsyncpa [#allocation3 + $0x1], 1 }
 0x13f   :  { %328 = vsyncpa [#allocation4], 1 }
 0x140   :  { %330 = vsyncpa [#allocation4 + $0x1], 1 }

</bundles_post_ra>
